<compile_context>
chip_gen: v7x
topology: tpu7x:2x2x1
jax: 0.10.0
libtpu: 0.0.40
codegen_flags: <defaults>
</compile_context>

<pallas_src>
import jax
import jax.numpy as jnp
from jax.experimental import pallas as pl
from jax.experimental.pallas import tpu as pltpu

LANE = 128          # padded feature width (all layer widths <= 128)
NUM_LAYERS = 5
BIAS_ROWS = 8       # one f32 sublane tile; row L holds layer L's bias


def _round_up(x, m):
    return (x + m - 1) // m * m


def _sigmoid(z):
    # logistic sigmoid via EUP tanh (no VALU divide): sigma(z) = 0.5*(tanh(z/2)+1)
    return 0.5 * (jnp.tanh(0.5 * z) + 1.0)


def dynamics_kernel(x_ref, w_ref, b_ref, o_ref):
    """Fused 5-layer MLP for one batch tile.

    x_ref: (TB, 128) bf16   -- input padded to 128 lanes (zeros past in_dim)
    w_ref: (640, 128) bf16  -- layer L weights at rows [128*L, 128*(L+1))  (resident)
    b_ref: (8, 128) f32     -- row L holds layer L's bias (zero-padded)    (resident)
    o_ref: (TB, 128) f32    -- lane-dense output; caller slices nb_states lanes
    """
    y = x_ref[...]                                            # bf16 (TB, 128)
    for layer in range(NUM_LAYERS):
        w = w_ref[layer * LANE:(layer + 1) * LANE, :]         # bf16 (128,128), 16-row aligned
        b = b_ref[layer:layer + 1, :]                         # f32 (1,128)
        z = jnp.dot(y, w, preferred_element_type=jnp.float32) + b
        if layer < NUM_LAYERS - 1:
            y = _sigmoid(z).astype(jnp.bfloat16)
        else:
            # Padded lanes of the last layer are exactly 0 (zero-padded W/b).
            o_ref[...] = z.astype(o_ref.dtype)


def pack_params(params):
    """Pack 5 (W[in,out], b[out]) pairs into:
         w_slab : bf16 (5*128, 128), layer L at rows 128*L .. 128*L+127
         b_block: f32  (8, 128), row L = bias of layer L
       Padded weight rows/cols and padded bias lanes are exactly zero (invariant)."""
    w_blocks = []
    b_block = jnp.zeros((BIAS_ROWS, LANE), jnp.float32)
    for layer, (w, b) in enumerate(params):
        in_dim, out_dim = w.shape
        w_blocks.append(
            jnp.zeros((LANE, LANE), jnp.float32).at[:in_dim, :out_dim].set(w))
        b_block = b_block.at[layer, :out_dim].set(b)
    w_slab = jnp.concatenate(w_blocks, axis=0).astype(jnp.bfloat16)   # (640,128) ~160 KB
    return w_slab, b_block


def _choose_tiles(batch, cap=1024):
    """Batch tile size (multiple of 8, <= cap) and padded batch.

    Tiles are sized so last-tile padding is small; for moderate batches (>256)
    the grid is forced to >= 2 tiles so v7x's two TensorCores both get work."""
    b8 = _round_up(batch, 8)
    ntiles = -(-b8 // cap)
    if ntiles == 1 and b8 > 256:
        ntiles = 2
    tb = _round_up(-(-b8 // ntiles), 8)
    return tb, tb * ntiles


def dynamics_forward(x, params):
    """x: (batch, nb_states+nb_actions) f32; params: list of (W[in,out], b[out])."""
    batch, in_dim = x.shape
    nb_states = params[-1][0].shape[1]

    tb, b_pad = _choose_tiles(batch)

    # bf16 input pad: half the HBM->VMEM bytes; it's the MXU operand dtype anyway.
    x_pad = jnp.zeros((b_pad, LANE), jnp.bfloat16).at[:batch, :in_dim].set(
        x.astype(jnp.bfloat16))
    w_slab, b_block = pack_params(params)

    out = pl.pallas_call(
        dynamics_kernel,
        out_shape=jax.ShapeDtypeStruct((b_pad, LANE), jnp.float32),
        grid_spec=pltpu.PrefetchScalarGridSpec(
            num_scalar_prefetch=0,
            grid=(b_pad // tb,),
            in_specs=[
                pl.BlockSpec((tb, LANE), lambda i: (i, 0)),       # x: batch-tiled
                pl.BlockSpec(w_slab.shape, lambda i: (0, 0)),     # weights: resident
                pl.BlockSpec(b_block.shape, lambda i: (0, 0)),    # biases: resident
            ],
            out_specs=pl.BlockSpec((tb, LANE), lambda i: (i, 0)),
        ),
        compiler_params=pltpu.CompilerParams(
            dimension_semantics=("parallel",),   # shard batch tiles across v7x TCs
        ),
    )(x_pad, w_slab, b_block)
    return out[:batch, :nb_states]


def init_linear(key, fan_in, fan_out):
    """Mimics nn.Linear default init: U(-1/sqrt(in), 1/sqrt(in)).
    Weight returned already transposed to [in, out]; bias is [out]."""
    kw, kb = jax.random.split(key)
    bound = 1.0 / (fan_in ** 0.5)
    w = jax.random.uniform(kw, (fan_in, fan_out), jnp.float32, -bound, bound)
    b = jax.random.uniform(kb, (fan_out,), jnp.float32, -bound, bound)
    return w, b


def make_params(key, nb_states, nb_actions):
    dims = [nb_states + nb_actions, 100, 80, 60, 40, nb_states]
    keys = jax.random.split(key, 5)
    return [init_linear(keys[i], dims[i], dims[i + 1]) for i in range(5)]


def reference_forward(x, params):
    """Pure-JAX reference matching the kernel's numerics (bf16 MXU operands,
    f32 accumulation, f32 bias add + sigmoid, bf16 hidden activations)."""
    y = x.astype(jnp.bfloat16)
    out = None
    for i, (w, b) in enumerate(params):
        z = jnp.dot(y, w.astype(jnp.bfloat16),
                    preferred_element_type=jnp.float32) + b
        if i < len(params) - 1:
            y = jax.nn.sigmoid(z).astype(jnp.bfloat16)
        else:
            out = z
    return out


if __name__ == "__main__":
    nb_states, nb_actions = 16, 4

    key = jax.random.PRNGKey(0)
    kx1, kx2, kp = jax.random.split(key, 3)
    params = make_params(kp, nb_states, nb_actions)

    # Small batch (single tile).
    x1 = jax.random.normal(kx1, (8, nb_states + nb_actions), jnp.float32)
    out1 = jax.block_until_ready(dynamics_forward(x1, params))
    ref1 = reference_forward(x1, params)
    assert out1.shape == (8, nb_states)
    err1 = float(jnp.max(jnp.abs(out1 - ref1)))
    assert jnp.allclose(out1, ref1, atol=2e-2, rtol=2e-2), f"max abs err {err1}"

    # Moderate batch (exercises the >=2-tile grid path).
    x2 = jax.random.normal(kx2, (272, nb_states + nb_actions), jnp.float32)
    out2 = jax.block_until_ready(dynamics_forward(x2, params))
    ref2 = reference_forward(x2, params)
    assert out2.shape == (272, nb_states)
    err2 = float(jnp.max(jnp.abs(out2 - ref2)))
    assert jnp.allclose(out2, ref2, atol=2e-2, rtol=2e-2), f"max abs err {err2}"

    print("KERNEL_OK")
</pallas_src>

<mosaic_0001>
module attributes {stable_mosaic.version = 11 : i64} {
  func.func @dynamics_kernel(%arg0: i32, %arg1: memref<8x128xbf16, #tpu.memory_space<vmem>>, %arg2: memref<640x128xbf16, #tpu.memory_space<vmem>>, %arg3: memref<8x128xf32, #tpu.memory_space<vmem>>, %arg4: memref<8x128xf32, #tpu.memory_space<vmem>>) attributes {dimension_semantics = [#tpu.dimension_semantics<parallel>], iteration_bounds = array<i64: 1>, scalar_prefetch = 0 : i64, scratch_operands = 0 : i64, tpu.core_type = #tpu.core_type<tc>, window_params = [{transform_indices = @transform_0, window_bounds = array<i64: 8, 128>}, {pipeline_mode = #tpu.pipeline_mode<synchronous>, transform_indices = @transform_1, window_bounds = array<i64: 640, 128>}, {pipeline_mode = #tpu.pipeline_mode<synchronous>, transform_indices = @transform_2, window_bounds = array<i64: 8, 128>}, {transform_indices = @transform_3, window_bounds = array<i64: 8, 128>}]} {
    %c0 = arith.constant 0 : index
    %c0_0 = arith.constant 0 : index
    %0 = vector.load %arg1[%c0, %c0_0] : memref<8x128xbf16, #tpu.memory_space<vmem>>, vector<8x128xbf16>
    %c0_1 = arith.constant 0 : index
    %c0_2 = arith.constant 0 : index
    %1 = vector.load %arg2[%c0_1, %c0_2] : memref<640x128xbf16, #tpu.memory_space<vmem>>, vector<128x128xbf16>
    %c0_3 = arith.constant 0 : index
    %c0_4 = arith.constant 0 : index
    %2 = vector.load %arg3[%c0_3, %c0_4] : memref<8x128xf32, #tpu.memory_space<vmem>>, vector<1x128xf32>
    %cst = arith.constant dense<0.000000e+00> : vector<8x128xf32>
    %3 = tpu.matmul %0, %1, %cst {dimension_numbers = #tpu.dot_dimension_numbers<[1], [0], [0], [1], [0, 0, 1, 1], [], []>} : vector<8x128xbf16>, vector<128x128xbf16>, vector<8x128xf32> -> vector<8x128xf32>
    %4 = vector.broadcast %2 : vector<1x128xf32> to vector<8x128xf32>
    %5 = arith.addf %3, %4 : vector<8x128xf32>
    %cst_5 = arith.constant 5.000000e-01 : f32
    %6 = vector.broadcast %cst_5 : f32 to vector<8x128xf32>
    %7 = arith.mulf %6, %5 : vector<8x128xf32>
    %8 = math.tanh %7 : vector<8x128xf32>
    %cst_6 = arith.constant 1.000000e+00 : f32
    %9 = vector.broadcast %cst_6 : f32 to vector<8x128xf32>
    %10 = arith.addf %8, %9 : vector<8x128xf32>
    %cst_7 = arith.constant 5.000000e-01 : f32
    %11 = vector.broadcast %cst_7 : f32 to vector<8x128xf32>
    %12 = arith.mulf %11, %10 : vector<8x128xf32>
    %13 = arith.truncf %12 : vector<8x128xf32> to vector<8x128xbf16>
    %c128 = arith.constant 128 : index
    %c0_8 = arith.constant 0 : index
    %14 = vector.load %arg2[%c128, %c0_8] : memref<640x128xbf16, #tpu.memory_space<vmem>>, vector<128x128xbf16>
    %c1 = arith.constant 1 : index
    %c0_9 = arith.constant 0 : index
    %15 = vector.load %arg3[%c1, %c0_9] : memref<8x128xf32, #tpu.memory_space<vmem>>, vector<1x128xf32>
    %cst_10 = arith.constant dense<0.000000e+00> : vector<8x128xf32>
    %16 = tpu.matmul %13, %14, %cst_10 {dimension_numbers = #tpu.dot_dimension_numbers<[1], [0], [0], [1], [0, 0, 1, 1], [], []>} : vector<8x128xbf16>, vector<128x128xbf16>, vector<8x128xf32> -> vector<8x128xf32>
    %17 = vector.broadcast %15 : vector<1x128xf32> to vector<8x128xf32>
    %18 = arith.addf %16, %17 : vector<8x128xf32>
    %cst_11 = arith.constant 5.000000e-01 : f32
    %19 = vector.broadcast %cst_11 : f32 to vector<8x128xf32>
    %20 = arith.mulf %19, %18 : vector<8x128xf32>
    %21 = math.tanh %20 : vector<8x128xf32>
    %cst_12 = arith.constant 1.000000e+00 : f32
    %22 = vector.broadcast %cst_12 : f32 to vector<8x128xf32>
    %23 = arith.addf %21, %22 : vector<8x128xf32>
    %cst_13 = arith.constant 5.000000e-01 : f32
    %24 = vector.broadcast %cst_13 : f32 to vector<8x128xf32>
    %25 = arith.mulf %24, %23 : vector<8x128xf32>
    %26 = arith.truncf %25 : vector<8x128xf32> to vector<8x128xbf16>
    %c256 = arith.constant 256 : index
    %c0_14 = arith.constant 0 : index
    %27 = vector.load %arg2[%c256, %c0_14] : memref<640x128xbf16, #tpu.memory_space<vmem>>, vector<128x128xbf16>
    %c2 = arith.constant 2 : index
    %c0_15 = arith.constant 0 : index
    %28 = vector.load %arg3[%c2, %c0_15] : memref<8x128xf32, #tpu.memory_space<vmem>>, vector<1x128xf32>
    %cst_16 = arith.constant dense<0.000000e+00> : vector<8x128xf32>
    %29 = tpu.matmul %26, %27, %cst_16 {dimension_numbers = #tpu.dot_dimension_numbers<[1], [0], [0], [1], [0, 0, 1, 1], [], []>} : vector<8x128xbf16>, vector<128x128xbf16>, vector<8x128xf32> -> vector<8x128xf32>
    %30 = vector.broadcast %28 : vector<1x128xf32> to vector<8x128xf32>
    %31 = arith.addf %29, %30 : vector<8x128xf32>
    %cst_17 = arith.constant 5.000000e-01 : f32
    %32 = vector.broadcast %cst_17 : f32 to vector<8x128xf32>
    %33 = arith.mulf %32, %31 : vector<8x128xf32>
    %34 = math.tanh %33 : vector<8x128xf32>
    %cst_18 = arith.constant 1.000000e+00 : f32
    %35 = vector.broadcast %cst_18 : f32 to vector<8x128xf32>
    %36 = arith.addf %34, %35 : vector<8x128xf32>
    %cst_19 = arith.constant 5.000000e-01 : f32
    %37 = vector.broadcast %cst_19 : f32 to vector<8x128xf32>
    %38 = arith.mulf %37, %36 : vector<8x128xf32>
    %39 = arith.truncf %38 : vector<8x128xf32> to vector<8x128xbf16>
    %c384 = arith.constant 384 : index
    %c0_20 = arith.constant 0 : index
    %40 = vector.load %arg2[%c384, %c0_20] : memref<640x128xbf16, #tpu.memory_space<vmem>>, vector<128x128xbf16>
    %c3 = arith.constant 3 : index
    %c0_21 = arith.constant 0 : index
    %41 = vector.load %arg3[%c3, %c0_21] : memref<8x128xf32, #tpu.memory_space<vmem>>, vector<1x128xf32>
    %cst_22 = arith.constant dense<0.000000e+00> : vector<8x128xf32>
    %42 = tpu.matmul %39, %40, %cst_22 {dimension_numbers = #tpu.dot_dimension_numbers<[1], [0], [0], [1], [0, 0, 1, 1], [], []>} : vector<8x128xbf16>, vector<128x128xbf16>, vector<8x128xf32> -> vector<8x128xf32>
    %43 = vector.broadcast %41 : vector<1x128xf32> to vector<8x128xf32>
    %44 = arith.addf %42, %43 : vector<8x128xf32>
    %cst_23 = arith.constant 5.000000e-01 : f32
    %45 = vector.broadcast %cst_23 : f32 to vector<8x128xf32>
    %46 = arith.mulf %45, %44 : vector<8x128xf32>
    %47 = math.tanh %46 : vector<8x128xf32>
    %cst_24 = arith.constant 1.000000e+00 : f32
    %48 = vector.broadcast %cst_24 : f32 to vector<8x128xf32>
    %49 = arith.addf %47, %48 : vector<8x128xf32>
    %cst_25 = arith.constant 5.000000e-01 : f32
    %50 = vector.broadcast %cst_25 : f32 to vector<8x128xf32>
    %51 = arith.mulf %50, %49 : vector<8x128xf32>
    %52 = arith.truncf %51 : vector<8x128xf32> to vector<8x128xbf16>
    %c512 = arith.constant 512 : index
    %c0_26 = arith.constant 0 : index
    %53 = vector.load %arg2[%c512, %c0_26] : memref<640x128xbf16, #tpu.memory_space<vmem>>, vector<128x128xbf16>
    %c4 = arith.constant 4 : index
    %c0_27 = arith.constant 0 : index
    %54 = vector.load %arg3[%c4, %c0_27] : memref<8x128xf32, #tpu.memory_space<vmem>>, vector<1x128xf32>
    %cst_28 = arith.constant dense<0.000000e+00> : vector<8x128xf32>
    %55 = tpu.matmul %52, %53, %cst_28 {dimension_numbers = #tpu.dot_dimension_numbers<[1], [0], [0], [1], [0, 0, 1, 1], [], []>} : vector<8x128xbf16>, vector<128x128xbf16>, vector<8x128xf32> -> vector<8x128xf32>
    %56 = vector.broadcast %54 : vector<1x128xf32> to vector<8x128xf32>
    %57 = arith.addf %55, %56 : vector<8x128xf32>
    %c0_29 = arith.constant 0 : index
    %c0_30 = arith.constant 0 : index
    %58 = vector.load %arg4[%c0_29, %c0_30] : memref<8x128xf32, #tpu.memory_space<vmem>>, vector<8x128xf32>
    tpu.vector_store %arg4[%c0_29, %c0_30], %57 {strides = array<i32>} : memref<8x128xf32, #tpu.memory_space<vmem>>, vector<8x128xf32>,
    return
  }
  func.func @transform_0(%arg0: i32) -> (i32, i32) {
    %c0_i32 = arith.constant 0 : i32
    %c0_i32_0 = arith.constant 0 : i32
    return %arg0, %c0_i32 : i32, i32
  }
  func.func @transform_1(%arg0: i32) -> (i32, i32) {
    %c0_i32 = arith.constant 0 : i32
    %c0_i32_0 = arith.constant 0 : i32
    %c0_i32_1 = arith.constant 0 : i32
    return %c0_i32, %c0_i32_0 : i32, i32
  }
  func.func @transform_2(%arg0: i32) -> (i32, i32) {
    %c0_i32 = arith.constant 0 : i32
    %c0_i32_0 = arith.constant 0 : i32
    %c0_i32_1 = arith.constant 0 : i32
    return %c0_i32, %c0_i32_0 : i32, i32
  }
  func.func @transform_3(%arg0: i32) -> (i32, i32) {
    %c0_i32 = arith.constant 0 : i32
    %c0_i32_0 = arith.constant 0 : i32
    return %arg0, %c0_i32 : i32, i32
  }
}

</mosaic_0001>

<bundles_post_ra>
// kernel: tpu_custom_call.1
= control target key start
LH: loop header
LB: loop body
LE: loop exit
PB: predicated region body
PF: predicated region fallthrough
CT: control target
= control target key end

     0   :  { %8 = vsyncpa [#allocation3], 0  ;;  %s1102_s0 = inlined_call_operand.hbm [shape: bf16[8,128], index: 0, kind: input, shape index: {}]   ;;  %s1103_s1 = inlined_call_operand.hbm [shape: bf16[640,128], index: 1, kind: input, shape index: {}]   ;;  %s1104_s2 = inlined_call_operand.hbm [shape: f32[8,128], index: 2, kind: input, shape index: {}]   ;;  %s1105_s3 = inlined_call_operand.hbm [shape: f32[8,128], index: 3, kind: output, shape index: {}]  }
   0x1   :  { %9 = vsyncpa [#allocation6], 0 }
   0x2   :  { %10 = vsyncpa [#allocation4], 0  ;;  %s976_s12 = smov [#allocation5]   ;;  %s882_s16 = scalar_lea.hbm %s1103_s1, 5120 }
   0x3   :  { %s26_s13 = sshll.u32 %s976_s12, 4  ;;  %p883_p0 = scmp.ne.s32.totalorder %s1103_s1, %s882_s16  ;;  %s27_s13 = int_to_ptr.vmem [resolvable:$true] %s26_s13 }
   0x4   :  { %p886_p1 = scmp.lt.u32.totalorder %s882_s16, %s1103_s1 }
   0x6   :  { %p888_p2 = pnand %p886_p1, %p883_p0 }
   0x8   :  { %891 = shalt.err (!%p888_p2)
}
   0x9   :  { %s892_s21 = scalar_lea.vmem %s27_s13, 5120  ;;  %p897_p4 = scmp.lt.s32.totalorder %s27_s13, %s27_s13 }
   0xa   :  { %p893_p3 = scmp.ne.s32.totalorder %s27_s13, %s892_s21  ;;  %p898_p5 = scmp.lt.s32.totalorder %s892_s21, %s892_s21 }
   0xc   :  { %p899_p6 = por %p898_p5, %p897_p4 }
   0xe   :  { %p900_p7 = pnand %p899_p6, %p893_p3 }
  0x10   :  { %903 = shalt.err (!%p900_p7)
}
  0x11   :  { %s977_s22 = smov 64   ;;  %s978_s23 = smov 4  }
  0x12   :  { %32 = dma.hbm_to_vmem [thread:$0]  %s1103_s1, 5120, %s27_s13, [#allocation6], %s977_s22, %s977_s22, %s978_s23  }
  0x13   :  { %s979_s26 = smov [#allocation2]   ;;  %s980_s28 = smov [#allocation7]  }
  0x14   :  { %s17_s27 = sshll.u32 %s979_s26, 4  ;;  %s39_s29 = sshll.u32 %s980_s28, 4  ;;  %s18_s27 = int_to_ptr.vmem [resolvable:$true] %s17_s27  ;;  %s40_s29 = int_to_ptr.vmem [resolvable:$true] %s39_s29 }
  0x15   :  { %s904_s5 = scalar_lea.hbm %s1102_s0, 64 }
  0x16   :  { %p905_p8 = scmp.ne.s32.totalorder %s1102_s0, %s904_s5  ;;  %p908_p9 = scmp.lt.u32.totalorder %s904_s5, %s1102_s0 }
  0x18   :  { %p910_p10 = pnand %p908_p9, %p905_p8 }
  0x1a   :  { %913 = shalt.err (!%p910_p10)
}
  0x1b   :  { %s914_s1 = scalar_lea.vmem %s18_s27, 64  ;;  %p919_p12 = scmp.lt.s32.totalorder %s18_s27, %s18_s27 }
  0x1c   :  { %p915_p11 = scmp.ne.s32.totalorder %s18_s27, %s914_s1  ;;  %p920_p13 = scmp.lt.s32.totalorder %s914_s1, %s914_s1 }
  0x1e   :  { %p921_p0 = por %p920_p13, %p919_p12 }
  0x20   :  { %p922_p1 = pnand %p921_p0, %p915_p11 }
  0x22   :  { %925 = shalt.err (!%p922_p1)
}
  0x23   :  { %20 = dma.hbm_to_vmem [thread:$0]  %s1102_s0, 64, %s18_s27, [#allocation3]  }
  0x24   :  { %s926_s14 = scalar_lea.hbm %s1104_s2, 128 }
  0x25   :  { %p927_p2 = scmp.ne.s32.totalorder %s1104_s2, %s926_s14  ;;  %p930_p3 = scmp.lt.u32.totalorder %s926_s14, %s1104_s2 }
  0x27   :  { %p932_p4 = pnand %p930_p3, %p927_p2 }
  0x29   :  { %935 = shalt.err (!%p932_p4)
}
  0x2a   :  { %s936_s19 = scalar_lea.vmem %s40_s29, 128  ;;  %p941_p6 = scmp.lt.s32.totalorder %s40_s29, %s40_s29 }
  0x2b   :  { %p937_p5 = scmp.ne.s32.totalorder %s40_s29, %s936_s19  ;;  %p942_p7 = scmp.lt.s32.totalorder %s936_s19, %s936_s19 }
  0x2d   :  { %p943_p8 = por %p942_p7, %p941_p6 }
  0x2f   :  { %p944_p9 = pnand %p943_p8, %p937_p5 }
  0x31   :  { %947 = shalt.err (!%p944_p9)
}
  0x32   :  { %42 = dma.hbm_to_vmem [thread:$0]  %s1104_s2, 128, %s40_s29, [#allocation6]  }
  0x33   :  { %970 = dma.done.wait [#allocation3], 64  }
  0x34   :  { %971 = vsyncadd [#allocation3], 4294967232 }
  0x35   :  { %972 = dma.done.wait [#allocation6], 5248  }
  0x36   :  { %973 = vsyncadd [#allocation6], 4294962048  ;;  %v981_v0 = vmov 0.0   ;;  %vm982_vm0 = vmmov 0   ;;  %v834_v1 = vld [vmem:[#allocation5] sm:$0xff]   ;;  %v835_v2 = vld [vmem:[#allocation5 + $0x8] sm:$0xff]  }
  0x37   :  { %726 = vmatprep.subr.bf16.mxu0 %v981_v0  ;;  %742 = vmatprep.mubr.msk.bf16.mxu0 %vm982_vm0, %v981_v0  ;;  %v836_v3 = vld [vmem:[#allocation5 + $0x10] sm:$0xff]   ;;  %v842_v4 = vld [vmem:[#allocation5 + $0x40] sm:$0xff]   ;;  %v837_v5 = vld [vmem:[#allocation5 + $0x18] sm:$0xff]   ;;  %s983_s2 = smov [#allocation8]  }
  0x38   :  { %746 = vmatprep.subr.bf16.mxu1 %v981_v0  ;;  %762 = vmatprep.mubr.msk.bf16.mxu1 %vm982_vm0, %v981_v0  ;;  %v843_v6 = vld [vmem:[#allocation5 + $0x48] sm:$0xff]   ;;  %v838_v7 = vld [vmem:[#allocation5 + $0x20] sm:$0xff]   ;;  %v844_v8 = vld [vmem:[#allocation5 + $0x50] sm:$0xff]   ;;  %s626_s21 = sshll.u32 %s983_s2, 4  ;;  %s627_s21 = int_to_ptr.vmem [resolvable:$true] %s626_s21 }
  0x39   :  { %727 = vmatpush3.bf16.msra.mxu0 %v834_v1  ;;  %747 = vmatpush3.bf16.msra.mxu1 %v842_v4  ;;  %v839_v9 = vld [vmem:[#allocation5 + $0x28] sm:$0xff]   ;;  %v840_v10 = vld [vmem:[#allocation5 + $0x30] sm:$0xff]   ;;  %v841_v11 = vld [vmem:[#allocation5 + $0x38] sm:$0xff]   ;;  %s948_s22 = scalar_lea.vmem %s627_s21, 128  ;;  %p953_p11 = scmp.lt.s32.totalorder %s627_s21, %s627_s21 }
  0x3a   :  { %728 = vmatprep.subr.bf16.mxu0 %v981_v0  ;;  %748 = vmatprep.subr.bf16.mxu1 %v981_v0  ;;  %v53_v12 = vld [vmem:[#allocation2] sm:$0xf]  ;;  %v846_v14 = vld [vmem:[#allocation5 + $0x60] sm:$0xff]   ;;  %v847_v15 = vld [vmem:[#allocation5 + $0x68] sm:$0xff]   ;;  %p949_p10 = scmp.ne.s32.totalorder %s627_s21, %s948_s22  ;;  %p954_p12 = scmp.lt.s32.totalorder %s948_s22, %s948_s22 }
  0x3b   :  { %v845_v13 = vld [vmem:[#allocation5 + $0x58] sm:$0xff]   ;;  %v848_v16 = vld [vmem:[#allocation5 + $0x70] sm:$0xff]   ;;  %v850_v18 = vld [vmem:[#allocation5 + $0x80] sm:$0xff]  }
  0x3c   :  { %v849_v17 = vld [vmem:[#allocation5 + $0x78] sm:$0xff]   ;;  %v851_v19 = vld [vmem:[#allocation5 + $0x88] sm:$0xff]   ;;  %v852_v20 = vld [vmem:[#allocation5 + $0x90] sm:$0xff]   ;;  %p955_p13 = por %p954_p12, %p953_p11 }
  0x3d   :  { %729 = vmatpush3.bf16.msra.mxu0 %v835_v2  ;;  %749 = vmatpush3.bf16.msra.mxu1 %v843_v6  ;;  %v636_v21 = vld [vmem:[#allocation7] ss:$0 sm:$0xff]  ;;  %v853_v32 = vld [vmem:[#allocation5 + $0x98] sm:$0xff]   ;;  %v855_v34 = vld [vmem:[#allocation5 + $0xa8] sm:$0xff]  }
  0x3e   :  { %730 = vmatprep.subr.bf16.mxu0 %v981_v0  ;;  %750 = vmatprep.subr.bf16.mxu1 %v981_v0  ;;  %v854_v33 = vld [vmem:[#allocation5 + $0xa0] sm:$0xff]   ;;  %v856_v35 = vld [vmem:[#allocation5 + $0xb0] sm:$0xff]   ;;  %v857_v36 = vld [vmem:[#allocation5 + $0xb8] sm:$0xff]   ;;  %p956_p0 = pnand %p955_p13, %p949_p10 }
  0x3f   :  { %v858_v37 = vld [vmem:[#allocation5 + $0xc0] sm:$0xff]   ;;  %v859_v38 = vld [vmem:[#allocation5 + $0xc8] sm:$0xff]   ;;  %v860_v39 = vld [vmem:[#allocation5 + $0xd0] sm:$0xff]  }
  0x40   :  { %v645_v40 = vld [vmem:[#allocation7 + $0x1] ss:$0 sm:$0xff]  ;;  %v861_v51 = vld [vmem:[#allocation5 + $0xd8] sm:$0xff]   ;;  %v863_v53 = vld [vmem:[#allocation5 + $0xe8] sm:$0xff]  }
  0x41   :  { %731 = vmatpush3.bf16.msra.mxu0 %v836_v3  ;;  %751 = vmatpush3.bf16.msra.mxu1 %v844_v8  ;;  %v862_v52 = vld [vmem:[#allocation5 + $0xe0] sm:$0xff]   ;;  %v864_v54 = vld [vmem:[#allocation5 + $0xf0] sm:$0xff]   ;;  %v865_v55 = vld [vmem:[#allocation5 + $0xf8] sm:$0xff]  }
  0x42   :  { %732 = vmatprep.subr.bf16.mxu0 %v981_v0  ;;  %752 = vmatprep.subr.bf16.mxu1 %v981_v0  ;;  %v866_v56 = vld [vmem:[#allocation5 + $0x100] sm:$0xff]   ;;  %v867_v57 = vld [vmem:[#allocation5 + $0x108] sm:$0xff]   ;;  %v868_v58 = vld [vmem:[#allocation5 + $0x110] sm:$0xff]  }
  0x43   :  { %v654_v59 = vld [vmem:[#allocation7 + $0x2] ss:$0 sm:$0xff] }
  0x44   :  { %v870_v8 = vld [vmem:[#allocation5 + $0x120] sm:$0xff]  }
  0x45   :  { %733 = vmatpush3.bf16.msra.mxu0 %v837_v5  ;;  %753 = vmatpush3.bf16.msra.mxu1 %v845_v13 }
  0x46   :  { %734 = vmatprep.subr.bf16.mxu0 %v981_v0  ;;  %754 = vmatprep.subr.bf16.mxu1 %v981_v0 }
  0x49   :  { %735 = vmatpush3.bf16.msra.mxu0 %v838_v7  ;;  %755 = vmatpush3.bf16.msra.mxu1 %v846_v14  ;;  %v869_v7 = vld [vmem:[#allocation5 + $0x118] sm:$0xff]  }
  0x4a   :  { %736 = vmatprep.subr.bf16.mxu0 %v981_v0  ;;  %756 = vmatprep.subr.bf16.mxu1 %v981_v0 }
  0x4d   :  { %737 = vmatpush3.bf16.msra.mxu0 %v839_v9  ;;  %757 = vmatpush3.bf16.msra.mxu1 %v847_v15  ;;  %v871_v9 = vld [vmem:[#allocation5 + $0x128] sm:$0xff]  }
  0x4e   :  { %738 = vmatprep.subr.bf16.mxu0 %v981_v0  ;;  %758 = vmatprep.subr.bf16.mxu1 %v981_v0 }
  0x51   :  { %739 = vmatpush3.bf16.msra.mxu0 %v840_v10  ;;  %759 = vmatpush3.bf16.msra.mxu1 %v848_v16  ;;  %v872_v10 = vld [vmem:[#allocation5 + $0x130] sm:$0xff]  }
  0x52   :  { %740 = vmatprep.subr.bf16.mxu0 %v981_v0  ;;  %760 = vmatprep.subr.bf16.mxu1 %v981_v0 }
  0x55   :  { %741 = vmatpush3.bf16.msra.mxu0 %v841_v11  ;;  %761 = vmatpush3.bf16.msra.mxu1 %v849_v17  ;;  %v873_v11 = vld [vmem:[#allocation5 + $0x138] sm:$0xff]  }
  0x56   :  { %766 = vmatprep.subr.bf16.mxu0 %v981_v0  ;;  %786 = vmatprep.subr.bf16.mxu1 %v981_v0 }
  0x58   :  { %743 = vmatmul.mubr.bf16.vlgmr.msra.gmra.mrb[0].mxu0 %v53_v12  ;;  %v663_v12 = vld [vmem:[#allocation7 + $0x3] ss:$0 sm:$0xff] }
  0x59   :  { %782 = vmatprep.mubr.msk.bf16.mxu0 %vm982_vm0, %v981_v0  ;;  %767 = vmatpush3.bf16.msra.mxu0 %v850_v18 }
  0x5a   :  { %768 = vmatprep.subr.bf16.mxu0 %v981_v0 }
  0x5d   :  { %769 = vmatpush3.bf16.msra.mxu0 %v851_v19 }
  0x5e   :  { %770 = vmatprep.subr.bf16.mxu0 %v981_v0 }
  0x61   :  { %771 = vmatpush3.bf16.msra.mxu0 %v852_v20 }
  0x62   :  { %772 = vmatprep.subr.bf16.mxu0 %v981_v0 }
  0x65   :  { %773 = vmatpush3.bf16.msra.mxu0 %v853_v32 }
  0x66   :  { %774 = vmatprep.subr.bf16.mxu0 %v981_v0 }
  0x69   :  { %775 = vmatpush3.bf16.msra.mxu0 %v854_v33 }
  0x6a   :  { %776 = vmatprep.subr.bf16.mxu0 %v981_v0 }
  0x6d   :  { %777 = vmatpush3.bf16.msra.mxu0 %v855_v34 }
  0x6e   :  { %778 = vmatprep.subr.bf16.mxu0 %v981_v0 }
  0x71   :  { %779 = vmatpush3.bf16.msra.mxu0 %v856_v35 }
  0x72   :  { %780 = vmatprep.subr.bf16.mxu0 %v981_v0 }
  0x75   :  { %781 = vmatpush3.bf16.msra.mxu0 %v857_v36 }
  0x76   :  { %806 = vmatprep.subr.bf16.mxu0 %v981_v0 }
 0x12b   :  { %v157_v22 = vpop.f32.mrb[0].mxu0 }
 0x12c   :  { %v158_v23 = vadd.f32 %v636_v21, %v157_v22  ;;  %v744_v24 = vpop.f32.mrb[1].mxu0 }
 0x12d   :  { %v160_v25 = vpop.f32.mrb[2].mxu0 }
 0x12e   :  { %v163_v26 = vmul.f32 0.5, %v158_v23  ;;  %v745_v27 = vpop.f32.mrb[3].mxu0  ;;  %v672_v23 = vld [vmem:[#allocation7 + $0x4] ss:$0 sm:$0xff] }
 0x130   :  { %874 = vtanh.f32 %v163_v26 }
 0x13a   :  { %v875_v28 = vpop.eup %874 }
 0x13b   :  { %v165_v29 = vadd.f32 1.0, %v875_v28 }
 0x13d   :  { %v166_v30 = vmul.f32 0.5, %v165_v29 }
 0x13f   :  { %v167_v31 = vpack.c.bf16 %v166_v30, %v166_v30 }
 0x141   :  { %763 = vmatmul.mubr.bf16.vlgmr.msra.gmra.mrb[0].mxu1 %v167_v31 }
 0x142   :  { %802 = vmatprep.mubr.msk.bf16.mxu1 %vm982_vm0, %v981_v0  ;;  %787 = vmatpush3.bf16.msra.mxu1 %v858_v37 }
 0x143   :  { %788 = vmatprep.subr.bf16.mxu1 %v981_v0 }
 0x146   :  { %789 = vmatpush3.bf16.msra.mxu1 %v859_v38 }
 0x147   :  { %790 = vmatprep.subr.bf16.mxu1 %v981_v0 }
 0x14a   :  { %791 = vmatpush3.bf16.msra.mxu1 %v860_v39 }
 0x14b   :  { %792 = vmatprep.subr.bf16.mxu1 %v981_v0 }
 0x14e   :  { %793 = vmatpush3.bf16.msra.mxu1 %v861_v51 }
 0x14f   :  { %794 = vmatprep.subr.bf16.mxu1 %v981_v0 }
 0x152   :  { %795 = vmatpush3.bf16.msra.mxu1 %v862_v52 }
 0x153   :  { %796 = vmatprep.subr.bf16.mxu1 %v981_v0 }
 0x156   :  { %797 = vmatpush3.bf16.msra.mxu1 %v863_v53 }
 0x157   :  { %798 = vmatprep.subr.bf16.mxu1 %v981_v0 }
 0x15a   :  { %799 = vmatpush3.bf16.msra.mxu1 %v864_v54 }
 0x15b   :  { %800 = vmatprep.subr.bf16.mxu1 %v981_v0 }
 0x15e   :  { %801 = vmatpush3.bf16.msra.mxu1 %v865_v55 }
 0x214   :  { %v271_v41 = vpop.f32.mrb[0].mxu1 }
 0x215   :  { %v272_v42 = vadd.f32 %v645_v40, %v271_v41  ;;  %v764_v43 = vpop.f32.mrb[1].mxu1 }
 0x216   :  { %v274_v44 = vpop.f32.mrb[2].mxu1 }
 0x217   :  { %v277_v45 = vmul.f32 0.5, %v272_v42  ;;  %v765_v46 = vpop.f32.mrb[3].mxu1 }
 0x219   :  { %876 = vtanh.f32 %v277_v45 }
 0x223   :  { %v877_v47 = vpop.eup %876 }
 0x224   :  { %v279_v48 = vadd.f32 1.0, %v877_v47 }
 0x226   :  { %v280_v49 = vmul.f32 0.5, %v279_v48 }
 0x228   :  { %v281_v50 = vpack.c.bf16 %v280_v49, %v280_v49 }
 0x22a   :  { %783 = vmatmul.mubr.bf16.vlgmr.msra.gmra.mrb[4].mxu0 %v281_v50 }
 0x22b   :  { %822 = vmatprep.mubr.msk.bf16.mxu0 %vm982_vm0, %v981_v0  ;;  %807 = vmatpush3.bf16.msra.mxu0 %v866_v56 }
 0x22c   :  { %808 = vmatprep.subr.bf16.mxu0 %v981_v0 }
 0x22f   :  { %809 = vmatpush3.bf16.msra.mxu0 %v867_v57 }
 0x230   :  { %810 = vmatprep.subr.bf16.mxu0 %v981_v0 }
 0x233   :  { %811 = vmatpush3.bf16.msra.mxu0 %v868_v58 }
 0x234   :  { %812 = vmatprep.subr.bf16.mxu0 %v981_v0 }
 0x237   :  { %813 = vmatpush3.bf16.msra.mxu0 %v869_v7 }
 0x238   :  { %814 = vmatprep.subr.bf16.mxu0 %v981_v0 }
 0x23b   :  { %815 = vmatpush3.bf16.msra.mxu0 %v870_v8 }
 0x23c   :  { %816 = vmatprep.subr.bf16.mxu0 %v981_v0 }
 0x23f   :  { %817 = vmatpush3.bf16.msra.mxu0 %v871_v9 }
 0x240   :  { %818 = vmatprep.subr.bf16.mxu0 %v981_v0 }
 0x243   :  { %819 = vmatpush3.bf16.msra.mxu0 %v872_v10 }
 0x244   :  { %820 = vmatprep.subr.bf16.mxu0 %v981_v0 }
 0x247   :  { %821 = vmatpush3.bf16.msra.mxu0 %v873_v11 }
 0x2fd   :  { %v385_v60 = vpop.f32.mrb[4].mxu0 }
 0x2fe   :  { %v386_v61 = vadd.f32 %v654_v59, %v385_v60  ;;  %v784_v62 = vpop.f32.mrb[5].mxu0 }
 0x2ff   :  { %v388_v63 = vpop.f32.mrb[6].mxu0 }
 0x300   :  { %v391_v1 = vmul.f32 0.5, %v386_v61  ;;  %v785_v2 = vpop.f32.mrb[7].mxu0 }
 0x302   :  { %878 = vtanh.f32 %v391_v1 }
 0x30c   :  { %v879_v3 = vpop.eup %878 }
 0x30d   :  { %v393_v4 = vadd.f32 1.0, %v879_v3 }
 0x30f   :  { %v394_v5 = vmul.f32 0.5, %v393_v4 }
 0x311   :  { %v395_v6 = vpack.c.bf16 %v394_v5, %v394_v5 }
 0x313   :  { %803 = vmatmul.mubr.bf16.vlgmr.msra.gmra.mrb[4].mxu1 %v395_v6 }
 0x3e6   :  { %v499_v13 = vpop.f32.mrb[4].mxu1 }
 0x3e7   :  { %v500_v14 = vadd.f32 %v663_v12, %v499_v13  ;;  %v804_v15 = vpop.f32.mrb[5].mxu1 }
 0x3e8   :  { %v502_v16 = vpop.f32.mrb[6].mxu1 }
 0x3e9   :  { %v505_v17 = vmul.f32 0.5, %v500_v14  ;;  %v805_v18 = vpop.f32.mrb[7].mxu1 }
 0x3eb   :  { %880 = vtanh.f32 %v505_v17 }
 0x3f5   :  { %v881_v19 = vpop.eup %880 }
 0x3f6   :  { %v507_v20 = vadd.f32 1.0, %v881_v19 }
 0x3f8   :  { %v508_v21 = vmul.f32 0.5, %v507_v20 }
 0x3fa   :  { %v509_v22 = vpack.c.bf16 %v508_v21, %v508_v21 }
 0x3fc   :  { %823 = vmatmul.mubr.bf16.vlgmr.msra.gmra.mrb[8].mxu0 %v509_v22 }
 0x4cf   :  { %v613_v24 = vpop.f32.mrb[8].mxu0 }
 0x4d0   :  { %v614_v0 = vadd.f32 %v672_v23, %v613_v24  ;;  %v824_v25 = vpop.f32.mrb[9].mxu0 }
 0x4d1   :  { %v616_v26 = vpop.f32.mrb[10].mxu0 }
 0x4d2   :  { %619 = vst [vmem:[#allocation8] sm:$0xff] %v614_v0  ;;  %v825_v27 = vpop.f32.mrb[11].mxu0 }
 0x4d3   :  { %959 = shalt.err (!%p956_p0)
}
 0x4d4   :  { %s960_s25 = scalar_lea.hbm %s1105_s3, 128 }
 0x4d5   :  { %p961_p1 = scmp.ne.s32.totalorder %s1105_s3, %s960_s25  ;;  %p964_p2 = scmp.lt.u32.totalorder %s960_s25, %s1105_s3 }
 0x4d7   :  { %p966_p3 = pnand %p964_p2, %p961_p1 }
 0x4d9   :  { %969 = shalt.err (!%p966_p3)
}
 0x4da   :  { %629 = dma.vmem_to_hbm [thread:$0]  %s627_s21, 128, %s1105_s3, [#allocation4]  }
 0x4db   :  { %974 = dma.done.wait [#allocation4], 128  }
 0x4dc   :  { %975 = vsyncadd [#allocation4], 4294967168 }
 0x4dd   :  { %633 = vsyncpa [#allocation3], 1 }
 0x4de   :  { %634 = vsyncpa [#allocation6], 1 }
 0x4df   :  { %635 = vsyncpa [#allocation4], 1 }

</bundles_post_ra>
